<compile_context>
chip_gen: v7x
topology: tpu7x:2x2x1
jax: 0.10.0
libtpu: 0.0.40
codegen_flags: <defaults>
</compile_context>

<pallas_src>
import jax
import jax.numpy as jnp
from jax.experimental import pallas as pl
from jax.experimental.pallas import tpu as pltpu


INPUT_SIZE = 4
HIDDEN_SIZE = 8
NUM_HIDDEN_LAYERS = 3
OUTPUT_SIZE = 2

_TILE_B_MAX = 2048   # lane-axis batch tile (multiple of 128); sweepable 512..8192


def _round_up(n, m):
    return ((n + m - 1) // m) * m


def _sigmoid(x):
    # sigmoid(x) == 0.5 * (tanh(x / 2) + 1): single EUP transcendental.
    return 0.5 * jnp.tanh(0.5 * x) + 0.5


def _linear_vpu(w, b, h):
    """y[o, :] = sum_i w[o, i] * h[i, :] + b[o]  via unrolled VPU broadcast-MACs.

    w: [out, in] (tiny), b: [out, 1], h: [in, TB] (batch on lanes) -> [out, TB].
    Each term is a lane-broadcast of w[:, i] times a sublane-broadcast of
    h[i, :]; contraction dims are 4 or 8, so the loop fully unrolls.
    """
    in_dim = w.shape[1]
    acc = w[:, 0:1] * h[0:1, :]
    for i in range(1, in_dim):
        acc = acc + w[:, i:i + 1] * h[i:i + 1, :]
    return acc + b  # bias broadcasts along lanes


def hybrid_mlp_kernel(x_ref,
                      w0_ref, b0_ref,
                      w1_ref, b1_ref,
                      w2_ref, b2_ref,
                      w3_ref, b3_ref,
                      out_ref):
    """Fused forward for one batch tile. x_ref: [4, TB], out_ref: [2, TB]."""
    x = x_ref[...].astype(jnp.float32)                       # [4, TB], lane-dense

    h = _sigmoid(_linear_vpu(w0_ref[...], b0_ref[...], x))   # [8, TB]
    h = _sigmoid(_linear_vpu(w1_ref[...], b1_ref[...], h))   # [8, TB]
    h = _sigmoid(_linear_vpu(w2_ref[...], b2_ref[...], h))   # [8, TB]
    corr = _linear_vpu(w3_ref[...], b3_ref[...], h)          # [2, TB]

    fdm = x[INPUT_SIZE - OUTPUT_SIZE:INPUT_SIZE, :]          # [2, TB], sublane slice
    out_ref[...] = (fdm + corr).astype(out_ref.dtype)        # lane-dense store


def hybrid_forward(x, params, tile_b=_TILE_B_MAX):
    """x: [B, 4] -> [B, 2]. Transposes to batch-on-lanes, pads B, tiles the grid."""
    (w0, b0), (w1, b1), (w2, b2), (w3, b3) = params          # w: [out, in], b: [out, 1]
    B = x.shape[0]

    b128 = _round_up(B, 128)
    tb = min(tile_b, b128)                 # tile is a multiple of 128 lanes
    b_pad = _round_up(B, tb)
    grid = (b_pad // tb,)

    xt = jnp.transpose(x)                  # [4, B]
    if b_pad != B:
        xt = jnp.pad(xt, ((0, 0), (0, b_pad - B)))           # zero-pad extra columns

    const_map = lambda i: (0, 0)           # params: resident, DMA'd once

    out_t = pl.pallas_call(
        hybrid_mlp_kernel,
        out_shape=jax.ShapeDtypeStruct((OUTPUT_SIZE, b_pad), x.dtype),
        grid=grid,
        in_specs=[
            pl.BlockSpec((INPUT_SIZE, tb), lambda i: (0, i)),
            pl.BlockSpec(w0.shape, const_map), pl.BlockSpec(b0.shape, const_map),
            pl.BlockSpec(w1.shape, const_map), pl.BlockSpec(b1.shape, const_map),
            pl.BlockSpec(w2.shape, const_map), pl.BlockSpec(b2.shape, const_map),
            pl.BlockSpec(w3.shape, const_map), pl.BlockSpec(b3.shape, const_map),
        ],
        out_specs=pl.BlockSpec((OUTPUT_SIZE, tb), lambda i: (0, i)),
        compiler_params=pltpu.CompilerParams(
            dimension_semantics=("parallel",)),
        cost_estimate=pl.CostEstimate(
            flops=352 * b_pad,             # 2*(4*8 + 8*8 + 8*8 + 8*2) per column
            transcendentals=24 * b_pad,    # 3 layers x 8 tanh per column
            bytes_accessed=24 * b_pad),    # 16 B in + 8 B out per column (f32)
    )(xt, w0, b0, w1, b1, w2, b2, w3, b3)

    return jnp.transpose(out_t[:, :B])     # [B, 2]


def init_params(key):
    """PyTorch nn.Linear-style init: U(-1/sqrt(fan_in), 1/sqrt(fan_in)).
    Weights stored [out_features, in_features] (PyTorch layout), biases [out, 1]."""
    dims = [INPUT_SIZE] + [HIDDEN_SIZE] * NUM_HIDDEN_LAYERS + [OUTPUT_SIZE]
    params = []
    for fan_in, fan_out in zip(dims[:-1], dims[1:]):
        key, kw, kb = jax.random.split(key, 3)
        bound = 1.0 / jnp.sqrt(float(fan_in))
        w = jax.random.uniform(kw, (fan_out, fan_in), jnp.float32, -bound, bound)
        b = jax.random.uniform(kb, (fan_out, 1), jnp.float32, -bound, bound)
        params.append((w, b))
    return params


def reference_forward(x, params):
    """Pure-JAX reference for correctness checking."""
    h = x
    for i, (w, b) in enumerate(params):
        h = h @ w.T + b[:, 0]
        if i < len(params) - 1:
            h = jax.nn.sigmoid(h)
    return x[:, INPUT_SIZE - OUTPUT_SIZE:] + h


if __name__ == "__main__":
    key = jax.random.PRNGKey(0)
    key_x, key_p = jax.random.split(key)

    B = 2
    x = jax.random.normal(key_x, (B, INPUT_SIZE), dtype=jnp.float32)
    params = init_params(key_p)

    out = hybrid_forward(x, params)
    out = jax.block_until_ready(out)

    ref = reference_forward(x, params)
    assert out.shape == (B, OUTPUT_SIZE), out.shape
    assert jnp.allclose(out, ref, atol=1e-5, rtol=1e-5), (out, ref)

    # Also exercise a batch that is not a multiple of the tile (padding path).
    B2 = 300
    x2 = jax.random.normal(jax.random.PRNGKey(7), (B2, INPUT_SIZE), dtype=jnp.float32)
    out2 = jax.block_until_ready(hybrid_forward(x2, params))
    assert jnp.allclose(out2, reference_forward(x2, params), atol=1e-5, rtol=1e-5)

    print("KERNEL_OK")
</pallas_src>

<mosaic_0001>
module attributes {stable_mosaic.version = 11 : i64} {
  func.func @hybrid_mlp_kernel(%arg0: i32, %arg1: memref<4x128xf32, #tpu.memory_space<vmem>>, %arg2: memref<8x4xf32, #tpu.memory_space<vmem>>, %arg3: memref<8x1xf32, #tpu.memory_space<vmem>>, %arg4: memref<8x8xf32, #tpu.memory_space<vmem>>, %arg5: memref<8x1xf32, #tpu.memory_space<vmem>>, %arg6: memref<8x8xf32, #tpu.memory_space<vmem>>, %arg7: memref<8x1xf32, #tpu.memory_space<vmem>>, %arg8: memref<2x8xf32, #tpu.memory_space<vmem>>, %arg9: memref<2x1xf32, #tpu.memory_space<vmem>>, %arg10: memref<2x128xf32, #tpu.memory_space<vmem>>) attributes {dimension_semantics = [#tpu.dimension_semantics<parallel>], iteration_bounds = array<i64: 1>, scalar_prefetch = 0 : i64, scratch_operands = 0 : i64, tpu.core_type = #tpu.core_type<tc>, window_params = [{transform_indices = @transform_0, window_bounds = array<i64: 4, 128>}, {pipeline_mode = #tpu.pipeline_mode<synchronous>, transform_indices = @transform_1, window_bounds = array<i64: 8, 4>}, {pipeline_mode = #tpu.pipeline_mode<synchronous>, transform_indices = @transform_2, window_bounds = array<i64: 8, 1>}, {pipeline_mode = #tpu.pipeline_mode<synchronous>, transform_indices = @transform_3, window_bounds = array<i64: 8, 8>}, {pipeline_mode = #tpu.pipeline_mode<synchronous>, transform_indices = @transform_4, window_bounds = array<i64: 8, 1>}, {pipeline_mode = #tpu.pipeline_mode<synchronous>, transform_indices = @transform_5, window_bounds = array<i64: 8, 8>}, {pipeline_mode = #tpu.pipeline_mode<synchronous>, transform_indices = @transform_6, window_bounds = array<i64: 8, 1>}, {pipeline_mode = #tpu.pipeline_mode<synchronous>, transform_indices = @transform_7, window_bounds = array<i64: 2, 8>}, {pipeline_mode = #tpu.pipeline_mode<synchronous>, transform_indices = @transform_8, window_bounds = array<i64: 2, 1>}, {transform_indices = @transform_9, window_bounds = array<i64: 2, 128>}]} {
    %c0 = arith.constant 0 : index
    %c0_0 = arith.constant 0 : index
    %0 = vector.load %arg1[%c0, %c0_0] : memref<4x128xf32, #tpu.memory_space<vmem>>, vector<4x128xf32>
    %c0_1 = arith.constant 0 : index
    %c0_2 = arith.constant 0 : index
    %1 = vector.load %arg2[%c0_1, %c0_2] : memref<8x4xf32, #tpu.memory_space<vmem>>, vector<8x4xf32>
    %c0_3 = arith.constant 0 : index
    %c0_4 = arith.constant 0 : index
    %2 = vector.load %arg3[%c0_3, %c0_4] : memref<8x1xf32, #tpu.memory_space<vmem>>, vector<8x1xf32>
    %3 = vector.extract_strided_slice %1 {offsets = [0, 0], sizes = [8, 1], strides = [1, 1]} : vector<8x4xf32> to vector<8x1xf32>
    %4 = vector.extract_strided_slice %0 {offsets = [0, 0], sizes = [1, 128], strides = [1, 1]} : vector<4x128xf32> to vector<1x128xf32>
    %5 = vector.broadcast %3 : vector<8x1xf32> to vector<8x128xf32>
    %6 = vector.broadcast %4 : vector<1x128xf32> to vector<8x128xf32>
    %7 = arith.mulf %5, %6 : vector<8x128xf32>
    %8 = vector.extract_strided_slice %1 {offsets = [0, 1], sizes = [8, 1], strides = [1, 1]} : vector<8x4xf32> to vector<8x1xf32>
    %9 = vector.extract_strided_slice %0 {offsets = [1, 0], sizes = [1, 128], strides = [1, 1]} : vector<4x128xf32> to vector<1x128xf32>
    %10 = vector.broadcast %8 : vector<8x1xf32> to vector<8x128xf32>
    %11 = vector.broadcast %9 : vector<1x128xf32> to vector<8x128xf32>
    %12 = arith.mulf %10, %11 : vector<8x128xf32>
    %13 = arith.addf %7, %12 : vector<8x128xf32>
    %14 = vector.extract_strided_slice %1 {offsets = [0, 2], sizes = [8, 1], strides = [1, 1]} : vector<8x4xf32> to vector<8x1xf32>
    %15 = vector.extract_strided_slice %0 {offsets = [2, 0], sizes = [1, 128], strides = [1, 1]} : vector<4x128xf32> to vector<1x128xf32>
    %16 = vector.broadcast %14 : vector<8x1xf32> to vector<8x128xf32>
    %17 = vector.broadcast %15 : vector<1x128xf32> to vector<8x128xf32>
    %18 = arith.mulf %16, %17 : vector<8x128xf32>
    %19 = arith.addf %13, %18 : vector<8x128xf32>
    %20 = vector.extract_strided_slice %1 {offsets = [0, 3], sizes = [8, 1], strides = [1, 1]} : vector<8x4xf32> to vector<8x1xf32>
    %21 = vector.extract_strided_slice %0 {offsets = [3, 0], sizes = [1, 128], strides = [1, 1]} : vector<4x128xf32> to vector<1x128xf32>
    %22 = vector.broadcast %20 : vector<8x1xf32> to vector<8x128xf32>
    %23 = vector.broadcast %21 : vector<1x128xf32> to vector<8x128xf32>
    %24 = arith.mulf %22, %23 : vector<8x128xf32>
    %25 = arith.addf %19, %24 : vector<8x128xf32>
    %26 = vector.broadcast %2 : vector<8x1xf32> to vector<8x128xf32>
    %27 = arith.addf %25, %26 : vector<8x128xf32>
    %cst = arith.constant 5.000000e-01 : f32
    %28 = vector.broadcast %cst : f32 to vector<8x128xf32>
    %29 = arith.mulf %28, %27 : vector<8x128xf32>
    %30 = math.tanh %29 : vector<8x128xf32>
    %cst_5 = arith.constant 5.000000e-01 : f32
    %31 = vector.broadcast %cst_5 : f32 to vector<8x128xf32>
    %32 = arith.mulf %31, %30 : vector<8x128xf32>
    %cst_6 = arith.constant 5.000000e-01 : f32
    %33 = vector.broadcast %cst_6 : f32 to vector<8x128xf32>
    %34 = arith.addf %32, %33 : vector<8x128xf32>
    %c0_7 = arith.constant 0 : index
    %c0_8 = arith.constant 0 : index
    %35 = vector.load %arg4[%c0_7, %c0_8] : memref<8x8xf32, #tpu.memory_space<vmem>>, vector<8x8xf32>
    %c0_9 = arith.constant 0 : index
    %c0_10 = arith.constant 0 : index
    %36 = vector.load %arg5[%c0_9, %c0_10] : memref<8x1xf32, #tpu.memory_space<vmem>>, vector<8x1xf32>
    %37 = vector.extract_strided_slice %35 {offsets = [0, 0], sizes = [8, 1], strides = [1, 1]} : vector<8x8xf32> to vector<8x1xf32>
    %38 = vector.extract_strided_slice %34 {offsets = [0, 0], sizes = [1, 128], strides = [1, 1]} : vector<8x128xf32> to vector<1x128xf32>
    %39 = vector.broadcast %37 : vector<8x1xf32> to vector<8x128xf32>
    %40 = vector.broadcast %38 : vector<1x128xf32> to vector<8x128xf32>
    %41 = arith.mulf %39, %40 : vector<8x128xf32>
    %42 = vector.extract_strided_slice %35 {offsets = [0, 1], sizes = [8, 1], strides = [1, 1]} : vector<8x8xf32> to vector<8x1xf32>
    %43 = vector.extract_strided_slice %34 {offsets = [1, 0], sizes = [1, 128], strides = [1, 1]} : vector<8x128xf32> to vector<1x128xf32>
    %44 = vector.broadcast %42 : vector<8x1xf32> to vector<8x128xf32>
    %45 = vector.broadcast %43 : vector<1x128xf32> to vector<8x128xf32>
    %46 = arith.mulf %44, %45 : vector<8x128xf32>
    %47 = arith.addf %41, %46 : vector<8x128xf32>
    %48 = vector.extract_strided_slice %35 {offsets = [0, 2], sizes = [8, 1], strides = [1, 1]} : vector<8x8xf32> to vector<8x1xf32>
    %49 = vector.extract_strided_slice %34 {offsets = [2, 0], sizes = [1, 128], strides = [1, 1]} : vector<8x128xf32> to vector<1x128xf32>
    %50 = vector.broadcast %48 : vector<8x1xf32> to vector<8x128xf32>
    %51 = vector.broadcast %49 : vector<1x128xf32> to vector<8x128xf32>
    %52 = arith.mulf %50, %51 : vector<8x128xf32>
    %53 = arith.addf %47, %52 : vector<8x128xf32>
    %54 = vector.extract_strided_slice %35 {offsets = [0, 3], sizes = [8, 1], strides = [1, 1]} : vector<8x8xf32> to vector<8x1xf32>
    %55 = vector.extract_strided_slice %34 {offsets = [3, 0], sizes = [1, 128], strides = [1, 1]} : vector<8x128xf32> to vector<1x128xf32>
    %56 = vector.broadcast %54 : vector<8x1xf32> to vector<8x128xf32>
    %57 = vector.broadcast %55 : vector<1x128xf32> to vector<8x128xf32>
    %58 = arith.mulf %56, %57 : vector<8x128xf32>
    %59 = arith.addf %53, %58 : vector<8x128xf32>
    %60 = vector.extract_strided_slice %35 {offsets = [0, 4], sizes = [8, 1], strides = [1, 1]} : vector<8x8xf32> to vector<8x1xf32>
    %61 = vector.extract_strided_slice %34 {offsets = [4, 0], sizes = [1, 128], strides = [1, 1]} : vector<8x128xf32> to vector<1x128xf32>
    %62 = vector.broadcast %60 : vector<8x1xf32> to vector<8x128xf32>
    %63 = vector.broadcast %61 : vector<1x128xf32> to vector<8x128xf32>
    %64 = arith.mulf %62, %63 : vector<8x128xf32>
    %65 = arith.addf %59, %64 : vector<8x128xf32>
    %66 = vector.extract_strided_slice %35 {offsets = [0, 5], sizes = [8, 1], strides = [1, 1]} : vector<8x8xf32> to vector<8x1xf32>
    %67 = vector.extract_strided_slice %34 {offsets = [5, 0], sizes = [1, 128], strides = [1, 1]} : vector<8x128xf32> to vector<1x128xf32>
    %68 = vector.broadcast %66 : vector<8x1xf32> to vector<8x128xf32>
    %69 = vector.broadcast %67 : vector<1x128xf32> to vector<8x128xf32>
    %70 = arith.mulf %68, %69 : vector<8x128xf32>
    %71 = arith.addf %65, %70 : vector<8x128xf32>
    %72 = vector.extract_strided_slice %35 {offsets = [0, 6], sizes = [8, 1], strides = [1, 1]} : vector<8x8xf32> to vector<8x1xf32>
    %73 = vector.extract_strided_slice %34 {offsets = [6, 0], sizes = [1, 128], strides = [1, 1]} : vector<8x128xf32> to vector<1x128xf32>
    %74 = vector.broadcast %72 : vector<8x1xf32> to vector<8x128xf32>
    %75 = vector.broadcast %73 : vector<1x128xf32> to vector<8x128xf32>
    %76 = arith.mulf %74, %75 : vector<8x128xf32>
    %77 = arith.addf %71, %76 : vector<8x128xf32>
    %78 = vector.extract_strided_slice %35 {offsets = [0, 7], sizes = [8, 1], strides = [1, 1]} : vector<8x8xf32> to vector<8x1xf32>
    %79 = vector.extract_strided_slice %34 {offsets = [7, 0], sizes = [1, 128], strides = [1, 1]} : vector<8x128xf32> to vector<1x128xf32>
    %80 = vector.broadcast %78 : vector<8x1xf32> to vector<8x128xf32>
    %81 = vector.broadcast %79 : vector<1x128xf32> to vector<8x128xf32>
    %82 = arith.mulf %80, %81 : vector<8x128xf32>
    %83 = arith.addf %77, %82 : vector<8x128xf32>
    %84 = vector.broadcast %36 : vector<8x1xf32> to vector<8x128xf32>
    %85 = arith.addf %83, %84 : vector<8x128xf32>
    %cst_11 = arith.constant 5.000000e-01 : f32
    %86 = vector.broadcast %cst_11 : f32 to vector<8x128xf32>
    %87 = arith.mulf %86, %85 : vector<8x128xf32>
    %88 = math.tanh %87 : vector<8x128xf32>
    %cst_12 = arith.constant 5.000000e-01 : f32
    %89 = vector.broadcast %cst_12 : f32 to vector<8x128xf32>
    %90 = arith.mulf %89, %88 : vector<8x128xf32>
    %cst_13 = arith.constant 5.000000e-01 : f32
    %91 = vector.broadcast %cst_13 : f32 to vector<8x128xf32>
    %92 = arith.addf %90, %91 : vector<8x128xf32>
    %c0_14 = arith.constant 0 : index
    %c0_15 = arith.constant 0 : index
    %93 = vector.load %arg6[%c0_14, %c0_15] : memref<8x8xf32, #tpu.memory_space<vmem>>, vector<8x8xf32>
    %c0_16 = arith.constant 0 : index
    %c0_17 = arith.constant 0 : index
    %94 = vector.load %arg7[%c0_16, %c0_17] : memref<8x1xf32, #tpu.memory_space<vmem>>, vector<8x1xf32>
    %95 = vector.extract_strided_slice %93 {offsets = [0, 0], sizes = [8, 1], strides = [1, 1]} : vector<8x8xf32> to vector<8x1xf32>
    %96 = vector.extract_strided_slice %92 {offsets = [0, 0], sizes = [1, 128], strides = [1, 1]} : vector<8x128xf32> to vector<1x128xf32>
    %97 = vector.broadcast %95 : vector<8x1xf32> to vector<8x128xf32>
    %98 = vector.broadcast %96 : vector<1x128xf32> to vector<8x128xf32>
    %99 = arith.mulf %97, %98 : vector<8x128xf32>
    %100 = vector.extract_strided_slice %93 {offsets = [0, 1], sizes = [8, 1], strides = [1, 1]} : vector<8x8xf32> to vector<8x1xf32>
    %101 = vector.extract_strided_slice %92 {offsets = [1, 0], sizes = [1, 128], strides = [1, 1]} : vector<8x128xf32> to vector<1x128xf32>
    %102 = vector.broadcast %100 : vector<8x1xf32> to vector<8x128xf32>
    %103 = vector.broadcast %101 : vector<1x128xf32> to vector<8x128xf32>
    %104 = arith.mulf %102, %103 : vector<8x128xf32>
    %105 = arith.addf %99, %104 : vector<8x128xf32>
    %106 = vector.extract_strided_slice %93 {offsets = [0, 2], sizes = [8, 1], strides = [1, 1]} : vector<8x8xf32> to vector<8x1xf32>
    %107 = vector.extract_strided_slice %92 {offsets = [2, 0], sizes = [1, 128], strides = [1, 1]} : vector<8x128xf32> to vector<1x128xf32>
    %108 = vector.broadcast %106 : vector<8x1xf32> to vector<8x128xf32>
    %109 = vector.broadcast %107 : vector<1x128xf32> to vector<8x128xf32>
    %110 = arith.mulf %108, %109 : vector<8x128xf32>
    %111 = arith.addf %105, %110 : vector<8x128xf32>
    %112 = vector.extract_strided_slice %93 {offsets = [0, 3], sizes = [8, 1], strides = [1, 1]} : vector<8x8xf32> to vector<8x1xf32>
    %113 = vector.extract_strided_slice %92 {offsets = [3, 0], sizes = [1, 128], strides = [1, 1]} : vector<8x128xf32> to vector<1x128xf32>
    %114 = vector.broadcast %112 : vector<8x1xf32> to vector<8x128xf32>
    %115 = vector.broadcast %113 : vector<1x128xf32> to vector<8x128xf32>
    %116 = arith.mulf %114, %115 : vector<8x128xf32>
    %117 = arith.addf %111, %116 : vector<8x128xf32>
    %118 = vector.extract_strided_slice %93 {offsets = [0, 4], sizes = [8, 1], strides = [1, 1]} : vector<8x8xf32> to vector<8x1xf32>
    %119 = vector.extract_strided_slice %92 {offsets = [4, 0], sizes = [1, 128], strides = [1, 1]} : vector<8x128xf32> to vector<1x128xf32>
    %120 = vector.broadcast %118 : vector<8x1xf32> to vector<8x128xf32>
    %121 = vector.broadcast %119 : vector<1x128xf32> to vector<8x128xf32>
    %122 = arith.mulf %120, %121 : vector<8x128xf32>
    %123 = arith.addf %117, %122 : vector<8x128xf32>
    %124 = vector.extract_strided_slice %93 {offsets = [0, 5], sizes = [8, 1], strides = [1, 1]} : vector<8x8xf32> to vector<8x1xf32>
    %125 = vector.extract_strided_slice %92 {offsets = [5, 0], sizes = [1, 128], strides = [1, 1]} : vector<8x128xf32> to vector<1x128xf32>
    %126 = vector.broadcast %124 : vector<8x1xf32> to vector<8x128xf32>
    %127 = vector.broadcast %125 : vector<1x128xf32> to vector<8x128xf32>
    %128 = arith.mulf %126, %127 : vector<8x128xf32>
    %129 = arith.addf %123, %128 : vector<8x128xf32>
    %130 = vector.extract_strided_slice %93 {offsets = [0, 6], sizes = [8, 1], strides = [1, 1]} : vector<8x8xf32> to vector<8x1xf32>
    %131 = vector.extract_strided_slice %92 {offsets = [6, 0], sizes = [1, 128], strides = [1, 1]} : vector<8x128xf32> to vector<1x128xf32>
    %132 = vector.broadcast %130 : vector<8x1xf32> to vector<8x128xf32>
    %133 = vector.broadcast %131 : vector<1x128xf32> to vector<8x128xf32>
    %134 = arith.mulf %132, %133 : vector<8x128xf32>
    %135 = arith.addf %129, %134 : vector<8x128xf32>
    %136 = vector.extract_strided_slice %93 {offsets = [0, 7], sizes = [8, 1], strides = [1, 1]} : vector<8x8xf32> to vector<8x1xf32>
    %137 = vector.extract_strided_slice %92 {offsets = [7, 0], sizes = [1, 128], strides = [1, 1]} : vector<8x128xf32> to vector<1x128xf32>
    %138 = vector.broadcast %136 : vector<8x1xf32> to vector<8x128xf32>
    %139 = vector.broadcast %137 : vector<1x128xf32> to vector<8x128xf32>
    %140 = arith.mulf %138, %139 : vector<8x128xf32>
    %141 = arith.addf %135, %140 : vector<8x128xf32>
    %142 = vector.broadcast %94 : vector<8x1xf32> to vector<8x128xf32>
    %143 = arith.addf %141, %142 : vector<8x128xf32>
    %cst_18 = arith.constant 5.000000e-01 : f32
    %144 = vector.broadcast %cst_18 : f32 to vector<8x128xf32>
    %145 = arith.mulf %144, %143 : vector<8x128xf32>
    %146 = math.tanh %145 : vector<8x128xf32>
    %cst_19 = arith.constant 5.000000e-01 : f32
    %147 = vector.broadcast %cst_19 : f32 to vector<8x128xf32>
    %148 = arith.mulf %147, %146 : vector<8x128xf32>
    %cst_20 = arith.constant 5.000000e-01 : f32
    %149 = vector.broadcast %cst_20 : f32 to vector<8x128xf32>
    %150 = arith.addf %148, %149 : vector<8x128xf32>
    %c0_21 = arith.constant 0 : index
    %c0_22 = arith.constant 0 : index
    %151 = vector.load %arg8[%c0_21, %c0_22] : memref<2x8xf32, #tpu.memory_space<vmem>>, vector<2x8xf32>
    %c0_23 = arith.constant 0 : index
    %c0_24 = arith.constant 0 : index
    %152 = vector.load %arg9[%c0_23, %c0_24] : memref<2x1xf32, #tpu.memory_space<vmem>>, vector<2x1xf32>
    %153 = vector.extract_strided_slice %151 {offsets = [0, 0], sizes = [2, 1], strides = [1, 1]} : vector<2x8xf32> to vector<2x1xf32>
    %154 = vector.extract_strided_slice %150 {offsets = [0, 0], sizes = [1, 128], strides = [1, 1]} : vector<8x128xf32> to vector<1x128xf32>
    %155 = vector.broadcast %153 : vector<2x1xf32> to vector<2x128xf32>
    %156 = vector.broadcast %154 : vector<1x128xf32> to vector<2x128xf32>
    %157 = arith.mulf %155, %156 : vector<2x128xf32>
    %158 = vector.extract_strided_slice %151 {offsets = [0, 1], sizes = [2, 1], strides = [1, 1]} : vector<2x8xf32> to vector<2x1xf32>
    %159 = vector.extract_strided_slice %150 {offsets = [1, 0], sizes = [1, 128], strides = [1, 1]} : vector<8x128xf32> to vector<1x128xf32>
    %160 = vector.broadcast %158 : vector<2x1xf32> to vector<2x128xf32>
    %161 = vector.broadcast %159 : vector<1x128xf32> to vector<2x128xf32>
    %162 = arith.mulf %160, %161 : vector<2x128xf32>
    %163 = arith.addf %157, %162 : vector<2x128xf32>
    %164 = vector.extract_strided_slice %151 {offsets = [0, 2], sizes = [2, 1], strides = [1, 1]} : vector<2x8xf32> to vector<2x1xf32>
    %165 = vector.extract_strided_slice %150 {offsets = [2, 0], sizes = [1, 128], strides = [1, 1]} : vector<8x128xf32> to vector<1x128xf32>
    %166 = vector.broadcast %164 : vector<2x1xf32> to vector<2x128xf32>
    %167 = vector.broadcast %165 : vector<1x128xf32> to vector<2x128xf32>
    %168 = arith.mulf %166, %167 : vector<2x128xf32>
    %169 = arith.addf %163, %168 : vector<2x128xf32>
    %170 = vector.extract_strided_slice %151 {offsets = [0, 3], sizes = [2, 1], strides = [1, 1]} : vector<2x8xf32> to vector<2x1xf32>
    %171 = vector.extract_strided_slice %150 {offsets = [3, 0], sizes = [1, 128], strides = [1, 1]} : vector<8x128xf32> to vector<1x128xf32>
    %172 = vector.broadcast %170 : vector<2x1xf32> to vector<2x128xf32>
    %173 = vector.broadcast %171 : vector<1x128xf32> to vector<2x128xf32>
    %174 = arith.mulf %172, %173 : vector<2x128xf32>
    %175 = arith.addf %169, %174 : vector<2x128xf32>
    %176 = vector.extract_strided_slice %151 {offsets = [0, 4], sizes = [2, 1], strides = [1, 1]} : vector<2x8xf32> to vector<2x1xf32>
    %177 = vector.extract_strided_slice %150 {offsets = [4, 0], sizes = [1, 128], strides = [1, 1]} : vector<8x128xf32> to vector<1x128xf32>
    %178 = vector.broadcast %176 : vector<2x1xf32> to vector<2x128xf32>
    %179 = vector.broadcast %177 : vector<1x128xf32> to vector<2x128xf32>
    %180 = arith.mulf %178, %179 : vector<2x128xf32>
    %181 = arith.addf %175, %180 : vector<2x128xf32>
    %182 = vector.extract_strided_slice %151 {offsets = [0, 5], sizes = [2, 1], strides = [1, 1]} : vector<2x8xf32> to vector<2x1xf32>
    %183 = vector.extract_strided_slice %150 {offsets = [5, 0], sizes = [1, 128], strides = [1, 1]} : vector<8x128xf32> to vector<1x128xf32>
    %184 = vector.broadcast %182 : vector<2x1xf32> to vector<2x128xf32>
    %185 = vector.broadcast %183 : vector<1x128xf32> to vector<2x128xf32>
    %186 = arith.mulf %184, %185 : vector<2x128xf32>
    %187 = arith.addf %181, %186 : vector<2x128xf32>
    %188 = vector.extract_strided_slice %151 {offsets = [0, 6], sizes = [2, 1], strides = [1, 1]} : vector<2x8xf32> to vector<2x1xf32>
    %189 = vector.extract_strided_slice %150 {offsets = [6, 0], sizes = [1, 128], strides = [1, 1]} : vector<8x128xf32> to vector<1x128xf32>
    %190 = vector.broadcast %188 : vector<2x1xf32> to vector<2x128xf32>
    %191 = vector.broadcast %189 : vector<1x128xf32> to vector<2x128xf32>
    %192 = arith.mulf %190, %191 : vector<2x128xf32>
    %193 = arith.addf %187, %192 : vector<2x128xf32>
    %194 = vector.extract_strided_slice %151 {offsets = [0, 7], sizes = [2, 1], strides = [1, 1]} : vector<2x8xf32> to vector<2x1xf32>
    %195 = vector.extract_strided_slice %150 {offsets = [7, 0], sizes = [1, 128], strides = [1, 1]} : vector<8x128xf32> to vector<1x128xf32>
    %196 = vector.broadcast %194 : vector<2x1xf32> to vector<2x128xf32>
    %197 = vector.broadcast %195 : vector<1x128xf32> to vector<2x128xf32>
    %198 = arith.mulf %196, %197 : vector<2x128xf32>
    %199 = arith.addf %193, %198 : vector<2x128xf32>
    %200 = vector.broadcast %152 : vector<2x1xf32> to vector<2x128xf32>
    %201 = arith.addf %199, %200 : vector<2x128xf32>
    %202 = vector.extract_strided_slice %0 {offsets = [2, 0], sizes = [2, 128], strides = [1, 1]} : vector<4x128xf32> to vector<2x128xf32>
    %203 = arith.addf %202, %201 : vector<2x128xf32>
    %c0_25 = arith.constant 0 : index
    %c0_26 = arith.constant 0 : index
    %204 = vector.load %arg10[%c0_25, %c0_26] : memref<2x128xf32, #tpu.memory_space<vmem>>, vector<2x128xf32>
    tpu.vector_store %arg10[%c0_25, %c0_26], %203 {strides = array<i32>} : memref<2x128xf32, #tpu.memory_space<vmem>>, vector<2x128xf32>,
    return
  }
  func.func @transform_0(%arg0: i32) -> (i32, i32) {
    %c0_i32 = arith.constant 0 : i32
    %c0_i32_0 = arith.constant 0 : i32
    return %c0_i32, %arg0 : i32, i32
  }
  func.func @transform_1(%arg0: i32) -> (i32, i32) {
    %c0_i32 = arith.constant 0 : i32
    %c0_i32_0 = arith.constant 0 : i32
    %c0_i32_1 = arith.constant 0 : i32
    return %c0_i32, %c0_i32_0 : i32, i32
  }
  func.func @transform_2(%arg0: i32) -> (i32, i32) {
    %c0_i32 = arith.constant 0 : i32
    %c0_i32_0 = arith.constant 0 : i32
    %c0_i32_1 = arith.constant 0 : i32
    return %c0_i32, %c0_i32_0 : i32, i32
  }
  func.func @transform_3(%arg0: i32) -> (i32, i32) {
    %c0_i32 = arith.constant 0 : i32
    %c0_i32_0 = arith.constant 0 : i32
    %c0_i32_1 = arith.constant 0 : i32
    return %c0_i32, %c0_i32_0 : i32, i32
  }
  func.func @transform_4(%arg0: i32) -> (i32, i32) {
    %c0_i32 = arith.constant 0 : i32
    %c0_i32_0 = arith.constant 0 : i32
    %c0_i32_1 = arith.constant 0 : i32
    return %c0_i32, %c0_i32_0 : i32, i32
  }
  func.func @transform_5(%arg0: i32) -> (i32, i32) {
    %c0_i32 = arith.constant 0 : i32
    %c0_i32_0 = arith.constant 0 : i32
    %c0_i32_1 = arith.constant 0 : i32
    return %c0_i32, %c0_i32_0 : i32, i32
  }
  func.func @transform_6(%arg0: i32) -> (i32, i32) {
    %c0_i32 = arith.constant 0 : i32
    %c0_i32_0 = arith.constant 0 : i32
    %c0_i32_1 = arith.constant 0 : i32
    return %c0_i32, %c0_i32_0 : i32, i32
  }
  func.func @transform_7(%arg0: i32) -> (i32, i32) {
    %c0_i32 = arith.constant 0 : i32
    %c0_i32_0 = arith.constant 0 : i32
    %c0_i32_1 = arith.constant 0 : i32
    return %c0_i32, %c0_i32_0 : i32, i32
  }
  func.func @transform_8(%arg0: i32) -> (i32, i32) {
    %c0_i32 = arith.constant 0 : i32
    %c0_i32_0 = arith.constant 0 : i32
    %c0_i32_1 = arith.constant 0 : i32
    return %c0_i32, %c0_i32_0 : i32, i32
  }
  func.func @transform_9(%arg0: i32) -> (i32, i32) {
    %c0_i32 = arith.constant 0 : i32
    %c0_i32_0 = arith.constant 0 : i32
    return %c0_i32, %arg0 : i32, i32
  }
}

</mosaic_0001>

<bundles_post_ra>
// kernel: tpu_custom_call.1
= control target key start
LH: loop header
LB: loop body
LE: loop exit
PB: predicated region body
PF: predicated region fallthrough
CT: control target
= control target key end

     0   :  { %v449_v1 = vmov 2   ;;  %v450_v2 = vmov 0   ;;  %s611_s0 = inlined_call_operand.vmem [shape: f32[4,128], index: 0, kind: input, shape index: {}]   ;;  %s612_s1 = inlined_call_operand.vmem [shape: f32[8,4], index: 1, kind: input, shape index: {}]   ;;  %s613_s2 = inlined_call_operand.vmem [shape: f32[8,1], index: 2, kind: input, shape index: {}]   ;;  %s614_s3 = inlined_call_operand.vmem [shape: f32[8,8], index: 3, kind: input, shape index: {}]   ;;  %s615_s4 = inlined_call_operand.vmem [shape: f32[8,1], index: 4, kind: input, shape index: {}]   ;;  %s616_s5 = inlined_call_operand.vmem [shape: f32[8,8], index: 5, kind: input, shape index: {}]   ;;  %s617_s6 = inlined_call_operand.vmem [shape: f32[8,1], index: 6, kind: input, shape index: {}]   ;;  %s618_s7 = inlined_call_operand.vmem [shape: f32[2,8], index: 7, kind: input, shape index: {}]   ;;  %s619_s8 = inlined_call_operand.vmem [shape: f32[2,1], index: 8, kind: input, shape index: {}]   ;;  %s620_s9 = inlined_call_operand.hbm [shape: f32[2,128], index: 9, kind: output, shape index: {}]  }
   0x1   :  { %v34_v0 = vld [vmem:[%s612_s1] sm:$0xff]  ;;  %388 = vset.pattern.permute.xlu1 %v449_v1  ;;  %386 = vset.pattern.permute.xlu0 %v450_v2 }
   0x2   :  { %57 = vperm.xlu1 %388, %v34_v0   ;;  %38 = vperm.xlu0 %386, %v34_v0  }
   0x3   :  { %14 = vsyncpa [#allocation3], 0  ;;  %v451_v3 = vmov 3   ;;  %v452_v4 = vmov 1   ;;  %v35_v5 = vld [vmem:[%s613_s2] sm:$0xff]  ;;  %v453_v7 = vmov 6   ;;  %v41_v16 = vlaneseq }
   0x4   :  { %v86_v6 = vld [vmem:[%s614_s3] sm:$0xff]  ;;  %v454_v8 = vmov 4   ;;  %v455_v10 = vmov 5   ;;  %v456_v11 = vmov 7  }
   0x5   :  { %v178_v9 = vld [vmem:[%s616_s5] sm:$0xff]  ;;  %v42_v17 = vshrl.u32 %v41_v16, 7 }
   0x6   :  { %389 = vset.pattern.permute.xlu1 %v451_v3  ;;  %387 = vset.pattern.permute.xlu0 %v452_v4  ;;  %v87_v12 = vld [vmem:[%s615_s4] sm:$0xff] }
   0x7   :  { %67 = vperm.xlu1 %389, %v34_v0   ;;  %47 = vperm.xlu0 %387, %v34_v0   ;;  %v270_v13 = vld [vmem:[%s618_s7] sm:$0x3]  ;;  %v545_v18 = vsub.s32 0, %v42_v17  ;;  %v547_v19 = vsub.s32 1, %v42_v17  ;;  %v554_v22 = vsub.s32 2, %v42_v17  ;;  %v556_v24 = vsub.s32 3, %v42_v17 }
   0x8   :  { %v179_v14 = vld [vmem:[%s617_s6] sm:$0xff]  ;;  %v569_v51 = vsub.s32 4, %v42_v17  ;;  %v572_v55 = vsub.s32 5, %v42_v17  ;;  %v575_v60 = vsub.s32 6, %v42_v17 }
   0x9   :  { %v271_v15 = vld [vmem:[%s619_s8] sm:$0x3] }
   0xa   :  { %v552_v20 = vld [vmem:[%s611_s0] sm:$0xf]  ;;  %s457_s0 = smov [#allocation2]  }
   0xb   :  { %390 = vset.pattern.permute.xlu1 %v450_v2  ;;  %391 = vset.pattern.permute.xlu0 %v450_v2  ;;  %v44_v25 = vrot.slane %v552_v20, %v545_v18  ;;  %v53_v26 = vrot.slane %v552_v20, %v547_v19  ;;  %v63_v27 = vrot.slane %v552_v20, %v554_v22  ;;  %s369_s8 = sshll.u32 %s457_s0, 4  ;;  %s370_s8 = int_to_ptr.vmem [resolvable:$true] %s369_s8 }
   0xc   :  { %78 = vperm.xlu1 %390, %v35_v5   ;;  %90 = vperm.xlu0 %391, %v86_v6   ;;  %v73_v28 = vrot.slane %v552_v20, %v556_v24  ;;  %s425_s20 = scalar_lea.vmem %s370_s8, 32  ;;  %p430_p1 = scmp.lt.s32.totalorder %s370_s8, %s370_s8 }
   0xd   :  { %p426_p0 = scmp.ne.s32.totalorder %s370_s8, %s425_s20  ;;  %p431_p2 = scmp.lt.s32.totalorder %s425_s20, %s425_s20 }
   0xf   :  { %p432_p3 = por %p431_p2, %p430_p1 }
  0x10   :  { %392 = vset.pattern.permute.xlu1 %v452_v4  ;;  %394 = vset.pattern.permute.xlu0 %v451_v3 }
  0x11   :  { %99 = vperm.xlu1 %392, %v86_v6   ;;  %119 = vperm.xlu0 %394, %v86_v6   ;;  %p433_p4 = pnand %p432_p3, %p426_p0 }
  0x15   :  { %393 = vset.pattern.permute.xlu1 %v449_v1  ;;  %397 = vset.pattern.permute.xlu0 %v453_v7 }
  0x16   :  { %109 = vperm.xlu1 %393, %v86_v6   ;;  %149 = vperm.xlu0 %397, %v86_v6  }
  0x1a   :  { %395 = vset.pattern.permute.xlu1 %v454_v8  ;;  %400 = vset.pattern.permute.xlu0 %v450_v2 }
  0x1b   :  { %129 = vperm.xlu1 %395, %v86_v6   ;;  %182 = vperm.xlu0 %400, %v178_v9  }
  0x1f   :  { %396 = vset.pattern.permute.xlu1 %v455_v10  ;;  %403 = vset.pattern.permute.xlu0 %v451_v3 }
  0x20   :  { %139 = vperm.xlu1 %396, %v86_v6   ;;  %211 = vperm.xlu0 %403, %v178_v9  }
  0x24   :  { %398 = vset.pattern.permute.xlu1 %v456_v11  ;;  %406 = vset.pattern.permute.xlu0 %v453_v7 }
  0x25   :  { %159 = vperm.xlu1 %398, %v86_v6   ;;  %241 = vperm.xlu0 %406, %v178_v9  }
  0x29   :  { %399 = vset.pattern.permute.xlu1 %v450_v2  ;;  %409 = vset.pattern.permute.xlu0 %v450_v2 }
  0x2a   :  { %170 = vperm.xlu1 %399, %v87_v12   ;;  %274 = vperm.xlu0 %409, %v270_v13  }
  0x2e   :  { %401 = vset.pattern.permute.xlu1 %v452_v4  ;;  %412 = vset.pattern.permute.xlu0 %v451_v3 }
  0x2f   :  { %191 = vperm.xlu1 %401, %v178_v9   ;;  %303 = vperm.xlu0 %412, %v270_v13  }
  0x33   :  { %402 = vset.pattern.permute.xlu1 %v449_v1  ;;  %415 = vset.pattern.permute.xlu0 %v453_v7 }
  0x34   :  { %201 = vperm.xlu1 %402, %v178_v9   ;;  %333 = vperm.xlu0 %415, %v270_v13  }
  0x38   :  { %404 = vset.pattern.permute.xlu1 %v454_v8  ;;  %418 = vset.pattern.permute.xlu0 %v450_v2 }
  0x39   :  { %221 = vperm.xlu1 %404, %v178_v9  }
  0x3d   :  { %405 = vset.pattern.permute.xlu1 %v455_v10 }
  0x3e   :  { %231 = vperm.xlu1 %405, %v178_v9  }
  0x42   :  { %407 = vset.pattern.permute.xlu1 %v456_v11 }
  0x43   :  { %251 = vperm.xlu1 %407, %v178_v9  }
  0x47   :  { %408 = vset.pattern.permute.xlu1 %v450_v2 }
  0x48   :  { %262 = vperm.xlu1 %408, %v179_v14  }
  0x4c   :  { %410 = vset.pattern.permute.xlu1 %v452_v4 }
  0x4d   :  { %283 = vperm.xlu1 %410, %v270_v13  }
  0x51   :  { %411 = vset.pattern.permute.xlu1 %v449_v1  ;;  %v578_v1 = vsub.s32 7, %v42_v17 }
  0x52   :  { %293 = vperm.xlu1 %411, %v270_v13  }
  0x56   :  { %413 = vset.pattern.permute.xlu1 %v454_v8 }
  0x57   :  { %313 = vperm.xlu1 %413, %v270_v13  }
  0x5b   :  { %414 = vset.pattern.permute.xlu1 %v455_v10 }
  0x5c   :  { %323 = vperm.xlu1 %414, %v270_v13  }
  0x60   :  { %416 = vset.pattern.permute.xlu1 %v456_v11 }
  0x61   :  { %343 = vperm.xlu1 %416, %v270_v13  }
  0x65   :  { %417 = vset.pattern.permute.xlu1 %v450_v2 }
  0x66   :  { %354 = vperm.xlu1 %417, %v271_v15  }
  0x81   :  { %v39_v21 = vpop.permute.xlu0 %38  ;;  %v58_v23 = vpop.permute.xlu1 %57 }
  0x82   :  { %v45_v31 = vmul.f32 %v44_v25, %v39_v21  ;;  %v64_v33 = vmul.f32 %v63_v27, %v58_v23 }
  0x86   :  { %v48_v29 = vpop.permute.xlu0 %47  ;;  %v68_v30 = vpop.permute.xlu1 %67 }
  0x87   :  { %v54_v32 = vmul.f32 %v53_v26, %v48_v29  ;;  %v74_v35 = vmul.f32 %v73_v28, %v68_v30 }
  0x89   :  { %v55_v34 = vadd.f32 %v54_v32, %v45_v31 }
  0x8b   :  { %v65_v36 = vadd.f32 %v64_v33, %v55_v34  ;;  %v79_v37 = vpop.permute.xlu1 %78  ;;  %v91_v45 = vpop.permute.xlu0 %90 }
  0x8d   :  { %v75_v38 = vadd.f32 %v74_v35, %v65_v36 }
  0x8f   :  { %v81_v39 = vadd.f32 %v79_v37, %v75_v38 }
  0x90   :  { %v100_v41 = vpop.permute.xlu1 %99  ;;  %v120_v56 = vpop.permute.xlu0 %119 }
  0x91   :  { %v82_v40 = vmul.f32 0.5, %v81_v39 }
  0x93   :  { %419 = vtanh.f32 %v82_v40 }
  0x95   :  { %v110_v42 = vpop.permute.xlu1 %109  ;;  %v150_v5 = vpop.permute.xlu0 %149 }
  0x9a   :  { %v130_v47 = vpop.permute.xlu1 %129  ;;  %v183_v27 = vpop.permute.xlu0 %182 }
  0x9d   :  { %v420_v43 = vpop.eup %419 }
  0x9e   :  { %v84_v44 = vmul.f32 0.5, %v420_v43 }
  0x9f   :  { %v140_v61 = vpop.permute.xlu1 %139  ;;  %v212_v36 = vpop.permute.xlu0 %211 }
  0xa0   :  { %v85_v46 = vadd.f32 0.5, %v84_v44 }
  0xa2   :  { %v105_v48 = vrot.slane %v85_v46, %v547_v19  ;;  %v115_v49 = vrot.slane %v85_v46, %v554_v22  ;;  %v96_v50 = vrot.slane %v85_v46, %v545_v18  ;;  %v125_v54 = vrot.slane %v85_v46, %v556_v24 }
  0xa3   :  { %v135_v59 = vrot.slane %v85_v46, %v569_v51  ;;  %v145_v0 = vrot.slane %v85_v46, %v572_v55  ;;  %v155_v4 = vrot.slane %v85_v46, %v575_v60  ;;  %v165_v8 = vrot.slane %v85_v46, %v578_v1 }
  0xa4   :  { %v106_v52 = vmul.f32 %v105_v48, %v100_v41  ;;  %v97_v53 = vmul.f32 %v96_v50, %v91_v45  ;;  %v116_v57 = vmul.f32 %v115_v49, %v110_v42  ;;  %v126_v63 = vmul.f32 %v125_v54, %v120_v56  ;;  %v160_v9 = vpop.permute.xlu1 %159 }
  0xa5   :  { %v136_v2 = vmul.f32 %v135_v59, %v130_v47  ;;  %v146_v7 = vmul.f32 %v145_v0, %v140_v61  ;;  %v156_v11 = vmul.f32 %v155_v4, %v150_v5  ;;  %v166_v13 = vmul.f32 %v165_v8, %v160_v9  ;;  %v242_v47 = vpop.permute.xlu0 %241 }
  0xa6   :  { %v107_v58 = vadd.f32 %v106_v52, %v97_v53 }
  0xa8   :  { %v117_v62 = vadd.f32 %v116_v57, %v107_v58 }
  0xa9   :  { %v171_v14 = vpop.permute.xlu1 %170  ;;  %v275_v4 = vpop.permute.xlu0 %274 }
  0xaa   :  { %v127_v3 = vadd.f32 %v126_v63, %v117_v62 }
  0xac   :  { %v137_v6 = vadd.f32 %v136_v2, %v127_v3 }
  0xae   :  { %v147_v10 = vadd.f32 %v146_v7, %v137_v6  ;;  %v192_v17 = vpop.permute.xlu1 %191 }
  0xb0   :  { %v157_v12 = vadd.f32 %v156_v11, %v147_v10 }
  0xb2   :  { %v167_v15 = vadd.f32 %v166_v13, %v157_v12  ;;  %v304_v13 = vpop.permute.xlu0 %303 }
  0xb3   :  { %v202_v23 = vpop.permute.xlu1 %201 }
  0xb4   :  { %v173_v16 = vadd.f32 %v171_v14, %v167_v15 }
  0xb6   :  { %v174_v21 = vmul.f32 0.5, %v173_v16 }
  0xb8   :  { %421 = vtanh.f32 %v174_v21  ;;  %v222_v29 = vpop.permute.xlu1 %221 }
  0xbd   :  { %v232_v40 = vpop.permute.xlu1 %231 }
  0xc2   :  { %v422_v25 = vpop.eup %421  ;;  %v252_v52 = vpop.permute.xlu1 %251 }
  0xc3   :  { %v176_v26 = vmul.f32 0.5, %v422_v25 }
  0xc5   :  { %v177_v28 = vadd.f32 0.5, %v176_v26 }
  0xc7   :  { %v197_v30 = vrot.slane %v177_v28, %v547_v19  ;;  %v207_v31 = vrot.slane %v177_v28, %v554_v22  ;;  %v188_v32 = vrot.slane %v177_v28, %v545_v18  ;;  %v217_v35 = vrot.slane %v177_v28, %v556_v24  ;;  %v263_v58 = vpop.permute.xlu1 %262 }
  0xc8   :  { %v227_v38 = vrot.slane %v177_v28, %v569_v51  ;;  %v237_v41 = vrot.slane %v177_v28, %v572_v55  ;;  %v247_v46 = vrot.slane %v177_v28, %v575_v60  ;;  %v257_v50 = vrot.slane %v177_v28, %v578_v1 }
  0xc9   :  { %v198_v33 = vmul.f32 %v197_v30, %v192_v17  ;;  %v189_v34 = vmul.f32 %v188_v32, %v183_v27  ;;  %v208_v37 = vmul.f32 %v207_v31, %v202_v23  ;;  %v218_v43 = vmul.f32 %v217_v35, %v212_v36  ;;  %v334_v27 = vpop.permute.xlu0 %333 }
  0xca   :  { %v228_v44 = vmul.f32 %v227_v38, %v222_v29  ;;  %v238_v48 = vmul.f32 %v237_v41, %v232_v40  ;;  %v248_v54 = vmul.f32 %v247_v46, %v242_v47  ;;  %v258_v56 = vmul.f32 %v257_v50, %v252_v52 }
  0xcb   :  { %v199_v39 = vadd.f32 %v198_v33, %v189_v34 }
  0xcc   :  { %v284_v63 = vpop.permute.xlu1 %283 }
  0xcd   :  { %v209_v42 = vadd.f32 %v208_v37, %v199_v39 }
  0xcf   :  { %v219_v45 = vadd.f32 %v218_v43, %v209_v42 }
  0xd1   :  { %v229_v49 = vadd.f32 %v228_v44, %v219_v45  ;;  %v294_v0 = vpop.permute.xlu1 %293 }
  0xd3   :  { %v239_v53 = vadd.f32 %v238_v48, %v229_v49 }
  0xd5   :  { %v249_v57 = vadd.f32 %v248_v54, %v239_v53 }
  0xd6   :  { %v314_v6 = vpop.permute.xlu1 %313 }
  0xd7   :  { %v259_v59 = vadd.f32 %v258_v56, %v249_v57 }
  0xd9   :  { %v265_v61 = vadd.f32 %v263_v58, %v259_v59 }
  0xdb   :  { %v266_v62 = vmul.f32 0.5, %v265_v61  ;;  %v324_v21 = vpop.permute.xlu1 %323 }
  0xdd   :  { %423 = vtanh.f32 %v266_v62 }
  0xe7   :  { %v424_v2 = vpop.eup %423 }
  0xe8   :  { %v268_v3 = vmul.f32 0.5, %v424_v2 }
  0xea   :  { %v269_v5 = vadd.f32 0.5, %v268_v3 }
  0xec   :  { %v289_v7 = vrot.slane %v269_v5, %v547_v19  ;;  %v299_v8 = vrot.slane %v269_v5, %v554_v22  ;;  %v280_v9 = vrot.slane %v269_v5, %v545_v18  ;;  %v309_v12 = vrot.slane %v269_v5, %v556_v24  ;;  %v344_v24 = vpop.permute.xlu1 %343 }
  0xed   :  { %v319_v15 = vrot.slane %v269_v5, %v569_v51  ;;  %v329_v17 = vrot.slane %v269_v5, %v572_v55  ;;  %v339_v22 = vrot.slane %v269_v5, %v575_v60  ;;  %v349_v29 = vrot.slane %v269_v5, %v578_v1 }
  0xee   :  { %v290_v10 = vmul.f32 %v289_v7, %v284_v63  ;;  %v281_v11 = vmul.f32 %v280_v9, %v275_v4  ;;  %v300_v14 = vmul.f32 %v299_v8, %v294_v0  ;;  %v310_v25 = vmul.f32 %v309_v12, %v304_v13 }
  0xef   :  { %v320_v26 = vmul.f32 %v319_v15, %v314_v6  ;;  %v330_v18 = vmul.f32 %v329_v17, %v324_v21  ;;  %v340_v31 = vmul.f32 %v339_v22, %v334_v27  ;;  %v350_v32 = vmul.f32 %v349_v29, %v344_v24 }
  0xf0   :  { %v291_v16 = vadd.f32 %v290_v10, %v281_v11  ;;  %v355_v33 = vpop.permute.xlu1 %354 }
  0xf2   :  { %v301_v23 = vadd.f32 %v300_v14, %v291_v16 }
  0xf4   :  { %v311_v19 = vadd.f32 %v310_v25, %v301_v23 }
  0xf6   :  { %v321_v28 = vadd.f32 %v320_v26, %v311_v19 }
  0xf8   :  { %v331_v30 = vadd.f32 %v330_v18, %v321_v28 }
  0xfa   :  { %v341_v51 = vadd.f32 %v340_v31, %v331_v30 }
  0xfc   :  { %v351_v34 = vadd.f32 %v350_v32, %v341_v51 }
  0xfe   :  { %v357_v35 = vadd.f32 %v355_v33, %v351_v34 }
 0x100   :  { %v359_v55 = vrot.slane %v357_v35, 6 }
 0x102   :  { %v361_v36 = vadd.f32 %v359_v55, %v552_v20 }
 0x104   :  { %362 = vst [vmem:[#allocation2 - $0x2] sm:$0xc] %v361_v36 }
 0x105   :  { %436 = shalt.err (!%p433_p4)
}
 0x106   :  { %s437_s23 = scalar_lea.hbm %s620_s9, 32 }
 0x107   :  { %p438_p5 = scmp.ne.s32.totalorder %s620_s9, %s437_s23  ;;  %p441_p6 = scmp.lt.u32.totalorder %s437_s23, %s620_s9 }
 0x109   :  { %p443_p7 = pnand %p441_p6, %p438_p5 }
 0x10b   :  { %446 = shalt.err (!%p443_p7)
}
 0x10c   :  { %372 = dma.vmem_to_hbm [thread:$0]  %s370_s8, 32, %s620_s9, [#allocation3]  }
 0x10d   :  { %447 = dma.done.wait [#allocation3], 32  }
 0x10e   :  { %448 = vsyncadd [#allocation3], 4294967264 }
 0x10f   :  { %376 = vsyncpa [#allocation3], 1 }

</bundles_post_ra>
